<compile_context>
chip_gen: v7x
topology: tpu7x:2x2x1
jax: 0.10.0
libtpu: 0.0.40
codegen_flags: <defaults>
</compile_context>

<pallas_src>
import jax
import jax.numpy as jnp
from jax.experimental import pallas as pl
from jax.experimental.pallas import tpu as pltpu


# ---------------------------------------------------------------------------
# Kernels
# ---------------------------------------------------------------------------

def _energy_kernel(enc_ref, wq_ref, out_ref):
    # (1, H) x (ts, H) -> (1, ts): MXU matmul (bf16/f32 in, f32 accumulate),
    # result is already lane-dense along the sequence axis.
    out_ref[...] = jax.lax.dot_general(
        wq_ref[...], enc_ref[...],
        dimension_numbers=(((1,), (1,)), ((), ())),
        preferred_element_type=jnp.float32)


def _softmax_kernel(e_ref, out_ref):
    # Numerically stable softmax over the (1, S) energy row; exact divide so
    # the probabilities sum to 1 (runs once, cost is negligible).
    e = e_ref[...]
    m = jnp.max(e, axis=-1, keepdims=True)
    p = jnp.exp(e - m)
    out_ref[...] = p / jnp.sum(p, axis=-1, keepdims=True)


# ---------------------------------------------------------------------------
# Wrappers
# ---------------------------------------------------------------------------

def _select_tile(S, H, itemsize, ts_max, vmem_budget_bytes):
    """Sequence-tile rows: multiple of 128 (lane-dense output stores), capped so
    the double-buffered enc tile fits the VMEM budget; a single full-extent
    tile when the whole sequence fits."""
    ts = vmem_budget_bytes // (2 * H * itemsize)
    ts = min(ts, ts_max)
    ts = max(128, (ts // 128) * 128)
    if S <= ts:
        ts = S          # single tile == full array extent (any S allowed)
    return ts


def _attn_energies(enc, wq, *, ts_max=1024, vmem_budget_bytes=24 * 1024 * 1024):
    """Lane-dense energy row (1, S) = wq . enc_i for every i, streamed over S."""
    S, H = enc.shape
    ts = _select_tile(S, H, enc.dtype.itemsize, ts_max, vmem_budget_bytes)
    n_tiles = pl.cdiv(S, ts)
    wq2d = wq.reshape(1, H).astype(enc.dtype)   # match dtypes for the MXU dot

    energies = pl.pallas_call(
        _energy_kernel,
        out_shape=jax.ShapeDtypeStruct((1, n_tiles * ts), jnp.float32),
        grid=(n_tiles,),
        in_specs=[
            pl.BlockSpec((ts, H), lambda i: (i, 0)),   # streamed enc tile
            pl.BlockSpec((1, H), lambda i: (0, 0)),    # folded query (resident)
        ],
        out_specs=pl.BlockSpec((1, ts), lambda i: (0, i)),   # per-tile block
        compiler_params=pltpu.CompilerParams(
            dimension_semantics=("parallel",),
            vmem_limit_bytes=32 * 1024 * 1024),
    )(enc, wq2d)

    # Ragged last tile: garbage lanes >= S are sliced away (never enter softmax).
    return energies[:, :S]


def _attn_forward(enc, wq, *, ts_max=1024):
    """softmax_i(wq . enc_i): streamed energy kernel + tiny softmax kernel."""
    S, _ = enc.shape
    e = _attn_energies(enc, wq, ts_max=ts_max)            # (1, S) f32
    probs = pl.pallas_call(
        _softmax_kernel,
        out_shape=jax.ShapeDtypeStruct((1, S), jnp.float32),
    )(e)
    return probs[0]                                        # (S,)


# ---------------------------------------------------------------------------
# Module port
# ---------------------------------------------------------------------------

class Attn:
    """JAX/Pallas port of the PyTorch Attn module (dot / general / concat)."""

    def __init__(self, method, hidden_size, key=None):
        self.method = method
        self.hidden_size = hidden_size
        H = hidden_size
        if key is None:
            key = jax.random.PRNGKey(0)
        if method == 'general':
            k1, k2 = jax.random.split(key)
            bound = 1.0 / float(jnp.sqrt(H))
            self.W = jax.random.uniform(k1, (H, H), jnp.float32, -bound, bound)
            self.b = jax.random.uniform(k2, (H,), jnp.float32, -bound, bound)
        elif method == 'concat':
            k1, k2, k3 = jax.random.split(key, 3)
            bound = 1.0 / float(jnp.sqrt(2 * H))
            self.W = jax.random.uniform(k1, (H, 2 * H), jnp.float32, -bound, bound)
            self.b = jax.random.uniform(k2, (H,), jnp.float32, -bound, bound)
            # TODO(synk): torch leaves v uninitialized (torch.FloatTensor(H));
            # we use a deterministic uniform init instead.
            self.v = jax.random.uniform(k3, (H,), jnp.float32, -1.0, 1.0)

    def __call__(self, hidden, encoder_output):
        # hidden: (1, 1, H); encoder_output: (1, S, H)  (pre-squeeze, like torch)
        H = self.hidden_size
        h0 = hidden[0, 0]             # == hidden.squeeze(0)[0] / .view(-1)
        enc = encoder_output[0]       # (S, H) -- streamed in native dtype

        if self.method == 'dot':
            wq = h0
        elif self.method == 'general':
            # h0.(W enc_i + b) = (W^T h0).enc_i + h0.b   (const dropped: softmax-inv.)
            wq = self.W.T @ h0
        elif self.method == 'concat':
            # v.(W [h0; enc_i] + b) = (W_e^T v).enc_i + v.(W_h h0 + b)  (const dropped)
            wq = self.W[:, H:].T @ self.v
        else:
            raise ValueError(f"unknown method {self.method}")

        return _attn_forward(enc, wq)


# ---------------------------------------------------------------------------
# Pure-JAX reference (mirrors the PyTorch per-i loop exactly)
# ---------------------------------------------------------------------------

def _reference(method, attn, hidden, encoder_output):
    h0 = hidden[0, 0]
    enc = encoder_output[0]
    if method == 'dot':
        e = enc @ h0
    elif method == 'general':
        e = (enc @ attn.W.T + attn.b) @ h0
    elif method == 'concat':
        e = (jnp.concatenate(
            [jnp.broadcast_to(h0, enc.shape), enc], axis=1) @ attn.W.T
            + attn.b) @ attn.v
    return jax.nn.softmax(e, axis=0)


if __name__ == "__main__":
    key = jax.random.PRNGKey(0)
    k_h, k_e, k_p, k_t1, k_t2 = jax.random.split(key, 5)

    H = 32   # hidden_size
    S = 8    # seq_len
    hidden = jax.random.normal(k_h, (1, 1, H), jnp.float32)
    encoder_output = jax.random.normal(k_e, (1, S, H), jnp.float32)

    ok = True
    for method in ('dot', 'general', 'concat'):
        attn = Attn(method, H, key=k_p)
        out = jax.block_until_ready(attn(hidden, encoder_output))
        ref = _reference(method, attn, hidden, encoder_output)
        ok &= (out.shape == (S,))
        ok &= bool(jnp.allclose(out, ref, rtol=1e-3, atol=1e-3))
        ok &= bool(jnp.allclose(jnp.sum(out), 1.0, atol=1e-4))

    # Exercise the tiled path: multi-step parallel grid, ragged last tile
    # (no host-side padding; garbage lanes are sliced before the softmax).
    S2, H2 = 300, 64
    enc2 = jax.random.normal(k_t1, (S2, H2), jnp.float32)
    wq2 = jax.random.normal(k_t2, (H2,), jnp.float32)
    out2 = jax.block_until_ready(_attn_forward(enc2, wq2, ts_max=128))
    ref2 = jax.nn.softmax(enc2 @ wq2, axis=0)
    ok &= (out2.shape == (S2,))
    ok &= bool(jnp.allclose(out2, ref2, rtol=1e-3, atol=1e-3))

    if ok:
        print("KERNEL_OK")
</pallas_src>

<mosaic_0001>
module attributes {stable_mosaic.version = 11 : i64} {
  func.func @_energy_kernel(%arg0: i32, %arg1: memref<8x32xf32, #tpu.memory_space<vmem>>, %arg2: memref<1x32xf32, #tpu.memory_space<vmem>>, %arg3: memref<1x8xf32, #tpu.memory_space<vmem>>) attributes {dimension_semantics = [#tpu.dimension_semantics<parallel>], iteration_bounds = array<i64: 1>, scalar_prefetch = 0 : i64, scratch_operands = 0 : i64, tpu.core_type = #tpu.core_type<tc>, window_params = [{transform_indices = @transform_0, window_bounds = array<i64: 8, 32>}, {pipeline_mode = #tpu.pipeline_mode<synchronous>, transform_indices = @transform_1, window_bounds = array<i64: 1, 32>}, {transform_indices = @transform_2, window_bounds = array<i64: 1, 8>}]} {
    %c0 = arith.constant 0 : index
    %c0_0 = arith.constant 0 : index
    %0 = vector.load %arg2[%c0, %c0_0] : memref<1x32xf32, #tpu.memory_space<vmem>>, vector<1x32xf32>
    %c0_1 = arith.constant 0 : index
    %c0_2 = arith.constant 0 : index
    %1 = vector.load %arg1[%c0_1, %c0_2] : memref<8x32xf32, #tpu.memory_space<vmem>>, vector<8x32xf32>
    %cst = arith.constant dense<0.000000e+00> : vector<1x8xf32>
    %2 = tpu.matmul %0, %1, %cst {dimension_numbers = #tpu.dot_dimension_numbers<[1], [1], [0], [0], [0, 0, 1, 0], [], []>} : vector<1x32xf32>, vector<8x32xf32>, vector<1x8xf32> -> vector<1x8xf32>
    %c0_3 = arith.constant 0 : index
    %c0_4 = arith.constant 0 : index
    %3 = vector.load %arg3[%c0_3, %c0_4] : memref<1x8xf32, #tpu.memory_space<vmem>>, vector<1x8xf32>
    tpu.vector_store %arg3[%c0_3, %c0_4], %2 {strides = array<i32>} : memref<1x8xf32, #tpu.memory_space<vmem>>, vector<1x8xf32>,
    return
  }
  func.func @transform_0(%arg0: i32) -> (i32, i32) {
    %c0_i32 = arith.constant 0 : i32
    %c0_i32_0 = arith.constant 0 : i32
    return %arg0, %c0_i32 : i32, i32
  }
  func.func @transform_1(%arg0: i32) -> (i32, i32) {
    %c0_i32 = arith.constant 0 : i32
    %c0_i32_0 = arith.constant 0 : i32
    %c0_i32_1 = arith.constant 0 : i32
    return %c0_i32, %c0_i32_0 : i32, i32
  }
  func.func @transform_2(%arg0: i32) -> (i32, i32) {
    %c0_i32 = arith.constant 0 : i32
    %c0_i32_0 = arith.constant 0 : i32
    return %c0_i32, %arg0 : i32, i32
  }
}

</mosaic_0001>

<bundles_post_ra>
// kernel: tpu_custom_call.1
= control target key start
LH: loop header
LB: loop body
LE: loop exit
PB: predicated region body
PF: predicated region fallthrough
CT: control target
= control target key end

     0   :  { %7 = vsyncpa [#allocation3], 0  ;;  %s227_s0 = inlined_call_operand.hbm [shape: f32[8,32], index: 0, kind: input, shape index: {}]   ;;  %s228_s1 = inlined_call_operand.vmem [shape: f32[1,32], index: 1, kind: input, shape index: {}]   ;;  %s229_s2 = inlined_call_operand.hbm [shape: f32[1,8], index: 2, kind: output, shape index: {}]  }
   0x1   :  { %8 = vsyncpa [#allocation4], 0  ;;  %s181_s9 = smov [#allocation2]   ;;  %s133_s13 = scalar_lea.hbm %s227_s0, 128 }
   0x2   :  { %s15_s10 = sshll.u32 %s181_s9, 4  ;;  %p134_p0 = scmp.ne.s32.totalorder %s227_s0, %s133_s13  ;;  %s16_s10 = int_to_ptr.vmem [resolvable:$true] %s15_s10 }
   0x3   :  { %p137_p1 = scmp.lt.u32.totalorder %s133_s13, %s227_s0 }
   0x5   :  { %p139_p2 = pnand %p137_p1, %p134_p0 }
   0x7   :  { %142 = shalt.err (!%p139_p2)
}
   0x8   :  { %s143_s18 = scalar_lea.vmem %s16_s10, 128  ;;  %p148_p4 = scmp.lt.s32.totalorder %s16_s10, %s16_s10 }
   0x9   :  { %p144_p3 = scmp.ne.s32.totalorder %s16_s10, %s143_s18  ;;  %p149_p5 = scmp.lt.s32.totalorder %s143_s18, %s143_s18 }
   0xb   :  { %p150_p6 = por %p149_p5, %p148_p4 }
   0xd   :  { %p151_p7 = pnand %p150_p6, %p144_p3 }
   0xf   :  { %154 = shalt.err (!%p151_p7)
}
  0x10   :  { %18 = dma.hbm_to_vmem [thread:$0]  %s227_s0, 128, %s16_s10, [#allocation3]  }
  0x11   :  { %177 = dma.done.wait [#allocation3], 128  }
  0x12   :  { %178 = vsyncadd [#allocation3], 4294967168  ;;  %v182_v0 = vmov 0.0   ;;  %vm183_vm0 = vmmov 0   ;;  %vm26_vm1 = vcmask 261120   ;;  %v25_v1 = vld [vmem:[#allocation2] sm:$0xff] }
  0x13   :  { %124 = vmatprep.subr.mxu0 %v182_v0  ;;  %126 = vmatprep.mubr.msk.f32.mxu0 %vm183_vm0, %v182_v0  ;;  %v24_v2 = vld [vmem:[%s228_s1] sm:$0x1]  ;;  %s184_s23 = smov [#allocation5]   ;;  %vm103_vm2 = vcmask 57344  }
  0x14   :  { %125 = vmatpush3.xpose.msk.msra.mxu0 %vm26_vm1, %v25_v1  ;;  %s111_s24 = sshll.u32 %s184_s23, 4  ;;  %s112_s24 = int_to_ptr.vmem [resolvable:$true] %s111_s24 }
  0x15   :  { %s155_s0 = scalar_lea.vmem %s112_s24, 16  ;;  %s159_s25 = scalar_lea.vmem %s112_s24, 32 }
  0x16   :  { %p156_p8 = scmp.ne.s32.totalorder %s112_s24, %s155_s0  ;;  %p160_p9 = scmp.lt.s32.totalorder %s112_s24, %s112_s24 }
  0x17   :  { %127 = vmatmul.mubr.msk.f32.vlgmr.msra.gmra.mrb[0].mxu0 %vm26_vm1, %v24_v2  ;;  %p161_p10 = scmp.lt.s32.totalorder %s159_s25, %s155_s0 }
  0x19   :  { %p162_p11 = por %p161_p10, %p160_p9 }
  0x1b   :  { %p163_p12 = pnand %p162_p11, %p156_p8 }
  0xea   :  { %v99_v3 = vpop.f32.mrb[0].mxu0 }
  0xeb   :  { %v128_v4 = vpop.f32.mrb[1].mxu0  ;;  %104 = vst.msk [vmem:[#allocation5] sm:$0x1] %vm103_vm2, %v99_v3 }
  0xec   :  { %166 = shalt.err (!%p163_p12)
}
  0xed   :  { %s167_s1 = scalar_lea.hbm %s229_s2, 16 }
  0xee   :  { %p168_p13 = scmp.ne.s32.totalorder %s229_s2, %s167_s1  ;;  %p171_p0 = scmp.lt.u32.totalorder %s167_s1, %s229_s2 }
  0xf0   :  { %p173_p1 = pnand %p171_p0, %p168_p13 }
  0xf2   :  { %176 = shalt.err (!%p173_p1)
}
  0xf3   :  { %114 = dma.vmem_to_hbm [thread:$0]  %s112_s24, 16, %s229_s2, [#allocation4]  }
  0xf4   :  { %179 = dma.done.wait [#allocation4], 16  }
  0xf5   :  { %180 = vsyncadd [#allocation4], 4294967280 }
  0xf6   :  { %118 = vsyncpa [#allocation3], 1 }
  0xf7   :  { %119 = vsyncpa [#allocation4], 1 }

</bundles_post_ra>
